<compile_context>
chip_gen: v5e
topology: v5e:2x2
jax: 0.10.0
libtpu: 0.0.40
codegen_flags: <defaults>
</compile_context>

<pallas_src>
import functools
import math

import jax
import jax.numpy as jnp
import numpy as np
from jax import lax
from jax.experimental import pallas as pl
from jax.experimental.pallas import tpu as pltpu


def _layer_norm(t, gamma, beta, eps):
    mu = jnp.mean(t, axis=-1, keepdims=True)
    tc = t - mu
    var = jnp.mean(tc * tc, axis=-1, keepdims=True)
    return tc * lax.rsqrt(var + eps) * gamma + beta


def _encoder_layer_kernel(x_ref, maskb_ref, wqkv_ref, wo_ref, w1_ref, w2_ref,
                          bqkv_ref, b1_ref, boe_ref, ln_ref, out_ref,
                          *, num_heads, head_size, eps):
    """One batch element per grid step.

    Refs (VMEM tiles):
      x_ref     : (1, S, E)   f32   input activations
      maskb_ref : (1, S, S)   bf16  additive mask bias (0 keep, -1e9 masked)
      wqkv_ref  : (E, 3E)     bf16  fused [Wq*scale | Wk | Wv], (in, out)
      wo_ref    : (H, D, E)   bf16  output projection, split per head
      w1_ref    : (E, F)      bf16  FFN linear1
      w2_ref    : (F, E)      bf16  FFN linear2
      bqkv_ref  : (1, 3E)     f32   fused [bq*scale | bk | bv]
      b1_ref    : (1, F)      f32   FFN linear1 bias
      boe_ref   : (2, E)      f32   row0 = attn output bias, row1 = FFN out bias
      ln_ref    : (4, E)      f32   [gamma1; beta1; gamma2; beta2]
      out_ref   : (1, S, E)   f32
    """
    x = x_ref[0]                                    # (S, E) f32
    S, E = x.shape
    D = head_size

    # Additive mask bias, upconverted once (not per head).
    bias = maskb_ref[0].astype(jnp.float32)         # (S, S)

    # ---- fused QKV projection (single weight-stationary MXU pass) ----------
    x_bf = x.astype(jnp.bfloat16)
    qkv = jnp.dot(x_bf, wqkv_ref[...],
                  preferred_element_type=jnp.float32) + bqkv_ref[...]  # (S, 3E)

    # ---- per-head attention, accumulated straight into the out-projection --
    acc = jnp.zeros((S, E), jnp.float32)
    for h in range(num_heads):                      # static unrolled loop
        lo = h * D
        qh = qkv[:, lo:lo + D].astype(jnp.bfloat16)              # (S, D) pre-scaled
        kh = qkv[:, E + lo:E + lo + D].astype(jnp.bfloat16)      # (S, D)
        vh = qkv[:, 2 * E + lo:2 * E + lo + D].astype(jnp.bfloat16)

        # scores = qh @ kh^T without materializing a transpose.
        scores = lax.dot_general(
            qh, kh, (((1,), (1,)), ((), ())),
            preferred_element_type=jnp.float32) + bias           # (S, S)

        m = jnp.max(scores, axis=-1, keepdims=True)
        e = jnp.exp(scores - m)
        denom = jnp.sum(e, axis=-1, keepdims=True)
        attn = (e * pl.reciprocal(denom, approx=True)).astype(jnp.bfloat16)

        ctx_h = jnp.dot(attn, vh, preferred_element_type=jnp.float32)  # (S, D)
        acc = acc + jnp.dot(ctx_h.astype(jnp.bfloat16), wo_ref[h],
                            preferred_element_type=jnp.float32)        # (S, E)

    attn_out = acc + boe_ref[0:1, :]

    # ---- residual + LayerNorm1 ---------------------------------------------
    h1 = x + attn_out
    h1n = _layer_norm(h1, ln_ref[0:1, :], ln_ref[1:2, :], eps)

    # ---- feed-forward -------------------------------------------------------
    hid = jnp.dot(h1n.astype(jnp.bfloat16), w1_ref[...],
                  preferred_element_type=jnp.float32) + b1_ref[...]
    hid = jnp.maximum(hid, 0.0)
    ff = jnp.dot(hid.astype(jnp.bfloat16), w2_ref[...],
                 preferred_element_type=jnp.float32) + boe_ref[1:2, :]

    # ---- residual + LayerNorm2 ---------------------------------------------
    h2 = h1n + ff
    out = _layer_norm(h2, ln_ref[2:3, :], ln_ref[3:4, :], eps)
    out_ref[0] = out.astype(out_ref.dtype)


def encoder_layer(x, mask, params, num_heads, eps=1e-5):
    """x: (B, S, E) f32; mask: (B, 1, S, S) (0 = masked out)."""
    B, S, E = x.shape
    D = E // num_heads
    F = params["w1"].shape[0]

    # ---- host-side parameter prep (PyTorch W is (out, in); kernel wants (in, out))
    scale = 1.0 / math.sqrt(D)
    w_qkv = jnp.concatenate(
        [(params["wq"] * scale).T, params["wk"].T, params["wv"].T],
        axis=1).astype(jnp.bfloat16)                               # (E, 3E)
    b_qkv = jnp.concatenate(
        [params["bq"] * scale, params["bk"], params["bv"]]).reshape(1, 3 * E)
    wo_heads = params["wo"].T.reshape(num_heads, D, E).astype(jnp.bfloat16)
    w1 = params["w1"].T.astype(jnp.bfloat16)                        # (E, F)
    w2 = params["w2"].T.astype(jnp.bfloat16)                        # (F, E)
    b1 = params["b1"].reshape(1, F)
    b_oe = jnp.stack([params["bo"], params["b2"]], axis=0)          # (2, E)
    ln_params = jnp.stack(
        [params["g1"], params["be1"], params["g2"], params["be2"]], axis=0)  # (4, E)

    # Additive mask bias (bf16 halves its DMA footprint); broadcast over heads.
    mask_bias = jnp.where(mask[:, 0] == 0,
                          jnp.float32(-1.0e9), jnp.float32(0.0)
                          ).astype(jnp.bfloat16)                    # (B, S, S)

    kernel = functools.partial(_encoder_layer_kernel,
                               num_heads=num_heads, head_size=D, eps=eps)

    x_spec = pl.BlockSpec((1, S, E), lambda b: (b, 0, 0))
    mask_spec = pl.BlockSpec((1, S, S), lambda b: (b, 0, 0))
    wqkv_spec = pl.BlockSpec((E, 3 * E), lambda b: (0, 0))
    wo_spec = pl.BlockSpec((num_heads, D, E), lambda b: (0, 0, 0))
    w1_spec = pl.BlockSpec((E, F), lambda b: (0, 0))
    w2_spec = pl.BlockSpec((F, E), lambda b: (0, 0))
    bqkv_spec = pl.BlockSpec((1, 3 * E), lambda b: (0, 0))
    b1_spec = pl.BlockSpec((1, F), lambda b: (0, 0))
    boe_spec = pl.BlockSpec((2, E), lambda b: (0, 0))
    ln_spec = pl.BlockSpec((4, E), lambda b: (0, 0))

    return pl.pallas_call(
        kernel,
        out_shape=jax.ShapeDtypeStruct((B, S, E), x.dtype),
        grid_spec=pltpu.PrefetchScalarGridSpec(
            num_scalar_prefetch=0,
            grid=(B,),
            in_specs=[x_spec, mask_spec, wqkv_spec, wo_spec, w1_spec, w2_spec,
                      bqkv_spec, b1_spec, boe_spec, ln_spec],
            out_specs=x_spec,
        ),
        compiler_params=pltpu.CompilerParams(
            dimension_semantics=("parallel",)),
    )(x, mask_bias, w_qkv, wo_heads, w1, w2, b_qkv, b1, b_oe, ln_params)


def _reference(x, mask, params, num_heads, eps=1e-5):
    """Pure-JAX fp32 reference mirroring the PyTorch forward (eval mode)."""
    B, S, E = x.shape
    D = E // num_heads
    lin = lambda t, w, b: t @ w.T + b

    qp = lin(x, params["wq"], params["bq"])
    kp = lin(x, params["wk"], params["bk"])
    vp = lin(x, params["wv"], params["bv"])
    rs = lambda t: t.reshape(B, S, num_heads, D).transpose(0, 2, 1, 3)
    qh, kh, vh = rs(qp), rs(kp), rs(vp)
    scores = jnp.einsum("bhqd,bhkd->bhqk", qh, kh) / math.sqrt(D)
    scores = jnp.where(mask == 0, -1.0e9, scores)
    attn = jax.nn.softmax(scores, axis=-1)
    ctx = jnp.einsum("bhqk,bhkd->bhqd", attn, vh)
    ctx = ctx.transpose(0, 2, 1, 3).reshape(B, S, E)
    attn_out = lin(ctx, params["wo"], params["bo"])

    def ln(t, g, b):
        mu = t.mean(-1, keepdims=True)
        var = ((t - mu) ** 2).mean(-1, keepdims=True)
        return (t - mu) / jnp.sqrt(var + eps) * g + b

    h1 = ln(x + attn_out, params["g1"], params["be1"])
    hid = jax.nn.relu(lin(h1, params["w1"], params["b1"]))
    ff = lin(hid, params["w2"], params["b2"])
    return ln(h1 + ff, params["g2"], params["be2"])


if __name__ == "__main__":
    # Small deterministic configuration (real tuning needs E % 128 == 0, S >= 512).
    B, S, E, H, F = 2, 8, 32, 4, 64   # batch, seq, embed, heads, ffn hidden
    key = jax.random.PRNGKey(0)
    keys = jax.random.split(key, 16)

    def init_linear(k, fan_in, fan_out):
        kw, kb = jax.random.split(k)
        bound = 1.0 / math.sqrt(fan_in)
        w = jax.random.uniform(kw, (fan_out, fan_in), jnp.float32, -bound, bound)
        b = jax.random.uniform(kb, (fan_out,), jnp.float32, -bound, bound)
        return w, b

    wq, bq = init_linear(keys[0], E, E)
    wk, bk = init_linear(keys[1], E, E)
    wv, bv = init_linear(keys[2], E, E)
    wo, bo = init_linear(keys[3], E, E)
    w1, b1 = init_linear(keys[4], E, F)
    w2, b2 = init_linear(keys[5], F, E)

    params = {
        "wq": wq, "bq": bq, "wk": wk, "bk": bk, "wv": wv, "bv": bv,
        "wo": wo, "bo": bo, "w1": w1, "b1": b1, "w2": w2, "b2": b2,
        "g1": 1.0 + 0.1 * jax.random.normal(keys[6], (E,), jnp.float32),
        "be1": 0.1 * jax.random.normal(keys[7], (E,), jnp.float32),
        "g2": 1.0 + 0.1 * jax.random.normal(keys[8], (E,), jnp.float32),
        "be2": 0.1 * jax.random.normal(keys[9], (E,), jnp.float32),
    }

    x = jax.random.normal(keys[10], (B, S, E), jnp.float32)
    # Causal-style mask broadcast over heads: (B, 1, S, S); 1 = keep, 0 = masked.
    mask = jnp.tril(jnp.ones((S, S), jnp.float32))[None, None].repeat(B, axis=0)

    out = encoder_layer(x, mask, params, H)
    out = jax.block_until_ready(out)

    ref = _reference(x, mask, params, H)
    # bf16 MXU operands + approx reciprocal => loosened tolerance vs fp32 ref.
    np.testing.assert_allclose(np.asarray(out), np.asarray(ref),
                               rtol=5e-2, atol=5e-2)

    print("KERNEL_OK")
</pallas_src>

<mosaic_0001>
module attributes {stable_mosaic.version = 11 : i64} {
  func.func @_encoder_layer_kernel(%arg0: i32, %arg1: memref<1x8x32xf32, #tpu.memory_space<vmem>>, %arg2: memref<1x8x8xbf16, #tpu.memory_space<vmem>>, %arg3: memref<32x96xbf16, #tpu.memory_space<vmem>>, %arg4: memref<4x8x32xbf16, #tpu.memory_space<vmem>>, %arg5: memref<32x64xbf16, #tpu.memory_space<vmem>>, %arg6: memref<64x32xbf16, #tpu.memory_space<vmem>>, %arg7: memref<1x96xf32, #tpu.memory_space<vmem>>, %arg8: memref<1x64xf32, #tpu.memory_space<vmem>>, %arg9: memref<2x32xf32, #tpu.memory_space<vmem>>, %arg10: memref<4x32xf32, #tpu.memory_space<vmem>>, %arg11: memref<1x8x32xf32, #tpu.memory_space<vmem>>) attributes {dimension_semantics = [#tpu.dimension_semantics<parallel>], iteration_bounds = array<i64: 2>, scalar_prefetch = 0 : i64, scratch_operands = 0 : i64, tpu.core_type = #tpu.core_type<tc>, window_params = [{transform_indices = @transform_0, window_bounds = array<i64: 1, 8, 32>}, {transform_indices = @transform_1, window_bounds = array<i64: 1, 8, 8>}, {pipeline_mode = #tpu.pipeline_mode<synchronous>, transform_indices = @transform_2, window_bounds = array<i64: 32, 96>}, {pipeline_mode = #tpu.pipeline_mode<synchronous>, transform_indices = @transform_3, window_bounds = array<i64: 4, 8, 32>}, {pipeline_mode = #tpu.pipeline_mode<synchronous>, transform_indices = @transform_4, window_bounds = array<i64: 32, 64>}, {pipeline_mode = #tpu.pipeline_mode<synchronous>, transform_indices = @transform_5, window_bounds = array<i64: 64, 32>}, {pipeline_mode = #tpu.pipeline_mode<synchronous>, transform_indices = @transform_6, window_bounds = array<i64: 1, 96>}, {pipeline_mode = #tpu.pipeline_mode<synchronous>, transform_indices = @transform_7, window_bounds = array<i64: 1, 64>}, {pipeline_mode = #tpu.pipeline_mode<synchronous>, transform_indices = @transform_8, window_bounds = array<i64: 2, 32>}, {pipeline_mode = #tpu.pipeline_mode<synchronous>, transform_indices = @transform_9, window_bounds = array<i64: 4, 32>}, {transform_indices = @transform_10, window_bounds = array<i64: 1, 8, 32>}]} {
    %c0 = arith.constant 0 : index
    %c0_0 = arith.constant 0 : index
    %c0_1 = arith.constant 0 : index
    %0 = vector.load %arg1[%c0, %c0_0, %c0_1] : memref<1x8x32xf32, #tpu.memory_space<vmem>>, vector<1x8x32xf32>
    %1 = vector.shape_cast %0 : vector<1x8x32xf32> to vector<8x32xf32>
    %c0_2 = arith.constant 0 : index
    %c0_3 = arith.constant 0 : index
    %c0_4 = arith.constant 0 : index
    %2 = vector.load %arg2[%c0_2, %c0_3, %c0_4] : memref<1x8x8xbf16, #tpu.memory_space<vmem>>, vector<1x8x8xbf16>
    %3 = vector.shape_cast %2 : vector<1x8x8xbf16> to vector<8x8xbf16>
    %4 = arith.extf %3 : vector<8x8xbf16> to vector<8x8xf32>
    %5 = arith.truncf %1 : vector<8x32xf32> to vector<8x32xbf16>
    %c0_5 = arith.constant 0 : index
    %c0_6 = arith.constant 0 : index
    %6 = vector.load %arg3[%c0_5, %c0_6] : memref<32x96xbf16, #tpu.memory_space<vmem>>, vector<32x96xbf16>
    %cst = arith.constant dense<0.000000e+00> : vector<8x96xf32>
    %7 = tpu.matmul %5, %6, %cst {dimension_numbers = #tpu.dot_dimension_numbers<[1], [0], [0], [1], [0, 0, 1, 1], [], []>} : vector<8x32xbf16>, vector<32x96xbf16>, vector<8x96xf32> -> vector<8x96xf32>
    %c0_7 = arith.constant 0 : index
    %c0_8 = arith.constant 0 : index
    %8 = vector.load %arg7[%c0_7, %c0_8] : memref<1x96xf32, #tpu.memory_space<vmem>>, vector<1x96xf32>
    %9 = vector.broadcast %8 : vector<1x96xf32> to vector<8x96xf32>
    %10 = arith.addf %7, %9 : vector<8x96xf32>
    %cst_9 = arith.constant 0.000000e+00 : f32
    %11 = vector.broadcast %cst_9 : f32 to vector<8x32xf32>
    %12 = vector.extract_strided_slice %10 {offsets = [0, 0], sizes = [8, 8], strides = [1, 1]} : vector<8x96xf32> to vector<8x8xf32>
    %13 = arith.truncf %12 : vector<8x8xf32> to vector<8x8xbf16>
    %14 = vector.extract_strided_slice %10 {offsets = [0, 32], sizes = [8, 8], strides = [1, 1]} : vector<8x96xf32> to vector<8x8xf32>
    %15 = arith.truncf %14 : vector<8x8xf32> to vector<8x8xbf16>
    %16 = vector.extract_strided_slice %10 {offsets = [0, 64], sizes = [8, 8], strides = [1, 1]} : vector<8x96xf32> to vector<8x8xf32>
    %17 = arith.truncf %16 : vector<8x8xf32> to vector<8x8xbf16>
    %cst_10 = arith.constant dense<0.000000e+00> : vector<8x8xf32>
    %18 = tpu.matmul %13, %15, %cst_10 {dimension_numbers = #tpu.dot_dimension_numbers<[1], [1], [0], [0], [0, 0, 1, 0], [], []>} : vector<8x8xbf16>, vector<8x8xbf16>, vector<8x8xf32> -> vector<8x8xf32>
    %19 = arith.addf %18, %4 : vector<8x8xf32>
    %cst_11 = arith.constant dense<0xFF800000> : vector<8xf32>
    %20 = vector.multi_reduction <maximumf>, %19, %cst_11 [1] : vector<8x8xf32> to vector<8xf32>
    %21 = vector.shape_cast %20 : vector<8xf32> to vector<8x1xf32>
    %22 = vector.broadcast %21 : vector<8x1xf32> to vector<8x8xf32>
    %23 = arith.subf %19, %22 : vector<8x8xf32>
    %24 = math.exp %23 : vector<8x8xf32>
    %cst_12 = arith.constant dense<0.000000e+00> : vector<8xf32>
    %25 = vector.multi_reduction <add>, %24, %cst_12 [1] : vector<8x8xf32> to vector<8xf32>
    %26 = vector.shape_cast %25 : vector<8xf32> to vector<8x1xf32>
    %27 = tpu.reciprocal %26 {approx = true} : vector<8x1xf32> -> vector<8x1xf32>
    %28 = vector.broadcast %27 : vector<8x1xf32> to vector<8x8xf32>
    %29 = arith.mulf %24, %28 : vector<8x8xf32>
    %30 = arith.truncf %29 : vector<8x8xf32> to vector<8x8xbf16>
    %cst_13 = arith.constant dense<0.000000e+00> : vector<8x8xf32>
    %31 = tpu.matmul %30, %17, %cst_13 {dimension_numbers = #tpu.dot_dimension_numbers<[1], [0], [0], [1], [0, 0, 1, 1], [], []>} : vector<8x8xbf16>, vector<8x8xbf16>, vector<8x8xf32> -> vector<8x8xf32>
    %32 = arith.truncf %31 : vector<8x8xf32> to vector<8x8xbf16>
    %c0_14 = arith.constant 0 : index
    %c0_15 = arith.constant 0 : index
    %c0_16 = arith.constant 0 : index
    %33 = vector.load %arg4[%c0_14, %c0_15, %c0_16] : memref<4x8x32xbf16, #tpu.memory_space<vmem>>, vector<1x8x32xbf16>
    %34 = vector.shape_cast %33 : vector<1x8x32xbf16> to vector<8x32xbf16>
    %cst_17 = arith.constant dense<0.000000e+00> : vector<8x32xf32>
    %35 = tpu.matmul %32, %34, %cst_17 {dimension_numbers = #tpu.dot_dimension_numbers<[1], [0], [0], [1], [0, 0, 1, 1], [], []>} : vector<8x8xbf16>, vector<8x32xbf16>, vector<8x32xf32> -> vector<8x32xf32>
    %36 = arith.addf %11, %35 : vector<8x32xf32>
    %37 = vector.extract_strided_slice %10 {offsets = [0, 8], sizes = [8, 8], strides = [1, 1]} : vector<8x96xf32> to vector<8x8xf32>
    %38 = arith.truncf %37 : vector<8x8xf32> to vector<8x8xbf16>
    %39 = vector.extract_strided_slice %10 {offsets = [0, 40], sizes = [8, 8], strides = [1, 1]} : vector<8x96xf32> to vector<8x8xf32>
    %40 = arith.truncf %39 : vector<8x8xf32> to vector<8x8xbf16>
    %41 = vector.extract_strided_slice %10 {offsets = [0, 72], sizes = [8, 8], strides = [1, 1]} : vector<8x96xf32> to vector<8x8xf32>
    %42 = arith.truncf %41 : vector<8x8xf32> to vector<8x8xbf16>
    %cst_18 = arith.constant dense<0.000000e+00> : vector<8x8xf32>
    %43 = tpu.matmul %38, %40, %cst_18 {dimension_numbers = #tpu.dot_dimension_numbers<[1], [1], [0], [0], [0, 0, 1, 0], [], []>} : vector<8x8xbf16>, vector<8x8xbf16>, vector<8x8xf32> -> vector<8x8xf32>
    %44 = arith.addf %43, %4 : vector<8x8xf32>
    %cst_19 = arith.constant dense<0xFF800000> : vector<8xf32>
    %45 = vector.multi_reduction <maximumf>, %44, %cst_19 [1] : vector<8x8xf32> to vector<8xf32>
    %46 = vector.shape_cast %45 : vector<8xf32> to vector<8x1xf32>
    %47 = vector.broadcast %46 : vector<8x1xf32> to vector<8x8xf32>
    %48 = arith.subf %44, %47 : vector<8x8xf32>
    %49 = math.exp %48 : vector<8x8xf32>
    %cst_20 = arith.constant dense<0.000000e+00> : vector<8xf32>
    %50 = vector.multi_reduction <add>, %49, %cst_20 [1] : vector<8x8xf32> to vector<8xf32>
    %51 = vector.shape_cast %50 : vector<8xf32> to vector<8x1xf32>
    %52 = tpu.reciprocal %51 {approx = true} : vector<8x1xf32> -> vector<8x1xf32>
    %53 = vector.broadcast %52 : vector<8x1xf32> to vector<8x8xf32>
    %54 = arith.mulf %49, %53 : vector<8x8xf32>
    %55 = arith.truncf %54 : vector<8x8xf32> to vector<8x8xbf16>
    %cst_21 = arith.constant dense<0.000000e+00> : vector<8x8xf32>
    %56 = tpu.matmul %55, %42, %cst_21 {dimension_numbers = #tpu.dot_dimension_numbers<[1], [0], [0], [1], [0, 0, 1, 1], [], []>} : vector<8x8xbf16>, vector<8x8xbf16>, vector<8x8xf32> -> vector<8x8xf32>
    %57 = arith.truncf %56 : vector<8x8xf32> to vector<8x8xbf16>
    %c1 = arith.constant 1 : index
    %c0_22 = arith.constant 0 : index
    %c0_23 = arith.constant 0 : index
    %58 = vector.load %arg4[%c1, %c0_22, %c0_23] : memref<4x8x32xbf16, #tpu.memory_space<vmem>>, vector<1x8x32xbf16>
    %59 = vector.shape_cast %58 : vector<1x8x32xbf16> to vector<8x32xbf16>
    %cst_24 = arith.constant dense<0.000000e+00> : vector<8x32xf32>
    %60 = tpu.matmul %57, %59, %cst_24 {dimension_numbers = #tpu.dot_dimension_numbers<[1], [0], [0], [1], [0, 0, 1, 1], [], []>} : vector<8x8xbf16>, vector<8x32xbf16>, vector<8x32xf32> -> vector<8x32xf32>
    %61 = arith.addf %36, %60 : vector<8x32xf32>
    %62 = vector.extract_strided_slice %10 {offsets = [0, 16], sizes = [8, 8], strides = [1, 1]} : vector<8x96xf32> to vector<8x8xf32>
    %63 = arith.truncf %62 : vector<8x8xf32> to vector<8x8xbf16>
    %64 = vector.extract_strided_slice %10 {offsets = [0, 48], sizes = [8, 8], strides = [1, 1]} : vector<8x96xf32> to vector<8x8xf32>
    %65 = arith.truncf %64 : vector<8x8xf32> to vector<8x8xbf16>
    %66 = vector.extract_strided_slice %10 {offsets = [0, 80], sizes = [8, 8], strides = [1, 1]} : vector<8x96xf32> to vector<8x8xf32>
    %67 = arith.truncf %66 : vector<8x8xf32> to vector<8x8xbf16>
    %cst_25 = arith.constant dense<0.000000e+00> : vector<8x8xf32>
    %68 = tpu.matmul %63, %65, %cst_25 {dimension_numbers = #tpu.dot_dimension_numbers<[1], [1], [0], [0], [0, 0, 1, 0], [], []>} : vector<8x8xbf16>, vector<8x8xbf16>, vector<8x8xf32> -> vector<8x8xf32>
    %69 = arith.addf %68, %4 : vector<8x8xf32>
    %cst_26 = arith.constant dense<0xFF800000> : vector<8xf32>
    %70 = vector.multi_reduction <maximumf>, %69, %cst_26 [1] : vector<8x8xf32> to vector<8xf32>
    %71 = vector.shape_cast %70 : vector<8xf32> to vector<8x1xf32>
    %72 = vector.broadcast %71 : vector<8x1xf32> to vector<8x8xf32>
    %73 = arith.subf %69, %72 : vector<8x8xf32>
    %74 = math.exp %73 : vector<8x8xf32>
    %cst_27 = arith.constant dense<0.000000e+00> : vector<8xf32>
    %75 = vector.multi_reduction <add>, %74, %cst_27 [1] : vector<8x8xf32> to vector<8xf32>
    %76 = vector.shape_cast %75 : vector<8xf32> to vector<8x1xf32>
    %77 = tpu.reciprocal %76 {approx = true} : vector<8x1xf32> -> vector<8x1xf32>
    %78 = vector.broadcast %77 : vector<8x1xf32> to vector<8x8xf32>
    %79 = arith.mulf %74, %78 : vector<8x8xf32>
    %80 = arith.truncf %79 : vector<8x8xf32> to vector<8x8xbf16>
    %cst_28 = arith.constant dense<0.000000e+00> : vector<8x8xf32>
    %81 = tpu.matmul %80, %67, %cst_28 {dimension_numbers = #tpu.dot_dimension_numbers<[1], [0], [0], [1], [0, 0, 1, 1], [], []>} : vector<8x8xbf16>, vector<8x8xbf16>, vector<8x8xf32> -> vector<8x8xf32>
    %82 = arith.truncf %81 : vector<8x8xf32> to vector<8x8xbf16>
    %c2 = arith.constant 2 : index
    %c0_29 = arith.constant 0 : index
    %c0_30 = arith.constant 0 : index
    %83 = vector.load %arg4[%c2, %c0_29, %c0_30] : memref<4x8x32xbf16, #tpu.memory_space<vmem>>, vector<1x8x32xbf16>
    %84 = vector.shape_cast %83 : vector<1x8x32xbf16> to vector<8x32xbf16>
    %cst_31 = arith.constant dense<0.000000e+00> : vector<8x32xf32>
    %85 = tpu.matmul %82, %84, %cst_31 {dimension_numbers = #tpu.dot_dimension_numbers<[1], [0], [0], [1], [0, 0, 1, 1], [], []>} : vector<8x8xbf16>, vector<8x32xbf16>, vector<8x32xf32> -> vector<8x32xf32>
    %86 = arith.addf %61, %85 : vector<8x32xf32>
    %87 = vector.extract_strided_slice %10 {offsets = [0, 24], sizes = [8, 8], strides = [1, 1]} : vector<8x96xf32> to vector<8x8xf32>
    %88 = arith.truncf %87 : vector<8x8xf32> to vector<8x8xbf16>
    %89 = vector.extract_strided_slice %10 {offsets = [0, 56], sizes = [8, 8], strides = [1, 1]} : vector<8x96xf32> to vector<8x8xf32>
    %90 = arith.truncf %89 : vector<8x8xf32> to vector<8x8xbf16>
    %91 = vector.extract_strided_slice %10 {offsets = [0, 88], sizes = [8, 8], strides = [1, 1]} : vector<8x96xf32> to vector<8x8xf32>
    %92 = arith.truncf %91 : vector<8x8xf32> to vector<8x8xbf16>
    %cst_32 = arith.constant dense<0.000000e+00> : vector<8x8xf32>
    %93 = tpu.matmul %88, %90, %cst_32 {dimension_numbers = #tpu.dot_dimension_numbers<[1], [1], [0], [0], [0, 0, 1, 0], [], []>} : vector<8x8xbf16>, vector<8x8xbf16>, vector<8x8xf32> -> vector<8x8xf32>
    %94 = arith.addf %93, %4 : vector<8x8xf32>
    %cst_33 = arith.constant dense<0xFF800000> : vector<8xf32>
    %95 = vector.multi_reduction <maximumf>, %94, %cst_33 [1] : vector<8x8xf32> to vector<8xf32>
    %96 = vector.shape_cast %95 : vector<8xf32> to vector<8x1xf32>
    %97 = vector.broadcast %96 : vector<8x1xf32> to vector<8x8xf32>
    %98 = arith.subf %94, %97 : vector<8x8xf32>
    %99 = math.exp %98 : vector<8x8xf32>
    %cst_34 = arith.constant dense<0.000000e+00> : vector<8xf32>
    %100 = vector.multi_reduction <add>, %99, %cst_34 [1] : vector<8x8xf32> to vector<8xf32>
    %101 = vector.shape_cast %100 : vector<8xf32> to vector<8x1xf32>
    %102 = tpu.reciprocal %101 {approx = true} : vector<8x1xf32> -> vector<8x1xf32>
    %103 = vector.broadcast %102 : vector<8x1xf32> to vector<8x8xf32>
    %104 = arith.mulf %99, %103 : vector<8x8xf32>
    %105 = arith.truncf %104 : vector<8x8xf32> to vector<8x8xbf16>
    %cst_35 = arith.constant dense<0.000000e+00> : vector<8x8xf32>
    %106 = tpu.matmul %105, %92, %cst_35 {dimension_numbers = #tpu.dot_dimension_numbers<[1], [0], [0], [1], [0, 0, 1, 1], [], []>} : vector<8x8xbf16>, vector<8x8xbf16>, vector<8x8xf32> -> vector<8x8xf32>
    %107 = arith.truncf %106 : vector<8x8xf32> to vector<8x8xbf16>
    %c3 = arith.constant 3 : index
    %c0_36 = arith.constant 0 : index
    %c0_37 = arith.constant 0 : index
    %108 = vector.load %arg4[%c3, %c0_36, %c0_37] : memref<4x8x32xbf16, #tpu.memory_space<vmem>>, vector<1x8x32xbf16>
    %109 = vector.shape_cast %108 : vector<1x8x32xbf16> to vector<8x32xbf16>
    %cst_38 = arith.constant dense<0.000000e+00> : vector<8x32xf32>
    %110 = tpu.matmul %107, %109, %cst_38 {dimension_numbers = #tpu.dot_dimension_numbers<[1], [0], [0], [1], [0, 0, 1, 1], [], []>} : vector<8x8xbf16>, vector<8x32xbf16>, vector<8x32xf32> -> vector<8x32xf32>
    %111 = arith.addf %86, %110 : vector<8x32xf32>
    %c0_39 = arith.constant 0 : index
    %c0_40 = arith.constant 0 : index
    %112 = vector.load %arg9[%c0_39, %c0_40] : memref<2x32xf32, #tpu.memory_space<vmem>>, vector<1x32xf32>
    %113 = vector.broadcast %112 : vector<1x32xf32> to vector<8x32xf32>
    %114 = arith.addf %111, %113 : vector<8x32xf32>
    %115 = arith.addf %1, %114 : vector<8x32xf32>
    %c0_41 = arith.constant 0 : index
    %c0_42 = arith.constant 0 : index
    %116 = vector.load %arg10[%c0_41, %c0_42] : memref<4x32xf32, #tpu.memory_space<vmem>>, vector<1x32xf32>
    %c1_43 = arith.constant 1 : index
    %c0_44 = arith.constant 0 : index
    %117 = vector.load %arg10[%c1_43, %c0_44] : memref<4x32xf32, #tpu.memory_space<vmem>>, vector<1x32xf32>
    %cst_45 = arith.constant dense<0.000000e+00> : vector<8xf32>
    %118 = vector.multi_reduction <add>, %115, %cst_45 [1] : vector<8x32xf32> to vector<8xf32>
    %119 = vector.shape_cast %118 : vector<8xf32> to vector<8x1xf32>
    %cst_46 = arith.constant 3.200000e+01 : f32
    %120 = vector.broadcast %cst_46 : f32 to vector<8x1xf32>
    %121 = arith.divf %119, %120 : vector<8x1xf32>
    %122 = vector.broadcast %121 : vector<8x1xf32> to vector<8x32xf32>
    %123 = arith.subf %115, %122 : vector<8x32xf32>
    %124 = arith.mulf %123, %123 : vector<8x32xf32>
    %cst_47 = arith.constant dense<0.000000e+00> : vector<8xf32>
    %125 = vector.multi_reduction <add>, %124, %cst_47 [1] : vector<8x32xf32> to vector<8xf32>
    %126 = vector.shape_cast %125 : vector<8xf32> to vector<8x1xf32>
    %cst_48 = arith.constant 3.200000e+01 : f32
    %127 = vector.broadcast %cst_48 : f32 to vector<8x1xf32>
    %128 = arith.divf %126, %127 : vector<8x1xf32>
    %cst_49 = arith.constant 9.99999974E-6 : f32
    %129 = vector.broadcast %cst_49 : f32 to vector<8x1xf32>
    %130 = arith.addf %128, %129 : vector<8x1xf32>
    %131 = math.rsqrt %130 : vector<8x1xf32>
    %132 = vector.broadcast %131 : vector<8x1xf32> to vector<8x32xf32>
    %133 = arith.mulf %123, %132 : vector<8x32xf32>
    %134 = vector.broadcast %116 : vector<1x32xf32> to vector<8x32xf32>
    %135 = arith.mulf %133, %134 : vector<8x32xf32>
    %136 = vector.broadcast %117 : vector<1x32xf32> to vector<8x32xf32>
    %137 = arith.addf %135, %136 : vector<8x32xf32>
    %138 = arith.truncf %137 : vector<8x32xf32> to vector<8x32xbf16>
    %c0_50 = arith.constant 0 : index
    %c0_51 = arith.constant 0 : index
    %139 = vector.load %arg5[%c0_50, %c0_51] : memref<32x64xbf16, #tpu.memory_space<vmem>>, vector<32x64xbf16>
    %cst_52 = arith.constant dense<0.000000e+00> : vector<8x64xf32>
    %140 = tpu.matmul %138, %139, %cst_52 {dimension_numbers = #tpu.dot_dimension_numbers<[1], [0], [0], [1], [0, 0, 1, 1], [], []>} : vector<8x32xbf16>, vector<32x64xbf16>, vector<8x64xf32> -> vector<8x64xf32>
    %c0_53 = arith.constant 0 : index
    %c0_54 = arith.constant 0 : index
    %141 = vector.load %arg8[%c0_53, %c0_54] : memref<1x64xf32, #tpu.memory_space<vmem>>, vector<1x64xf32>
    %142 = vector.broadcast %141 : vector<1x64xf32> to vector<8x64xf32>
    %143 = arith.addf %140, %142 : vector<8x64xf32>
    %cst_55 = arith.constant 0.000000e+00 : f32
    %144 = vector.broadcast %cst_55 : f32 to vector<8x64xf32>
    %145 = arith.maximumf %143, %144 : vector<8x64xf32>
    %146 = arith.truncf %145 : vector<8x64xf32> to vector<8x64xbf16>
    %c0_56 = arith.constant 0 : index
    %c0_57 = arith.constant 0 : index
    %147 = vector.load %arg6[%c0_56, %c0_57] : memref<64x32xbf16, #tpu.memory_space<vmem>>, vector<64x32xbf16>
    %cst_58 = arith.constant dense<0.000000e+00> : vector<8x32xf32>
    %148 = tpu.matmul %146, %147, %cst_58 {dimension_numbers = #tpu.dot_dimension_numbers<[1], [0], [0], [1], [0, 0, 1, 1], [], []>} : vector<8x64xbf16>, vector<64x32xbf16>, vector<8x32xf32> -> vector<8x32xf32>
    %c1_59 = arith.constant 1 : index
    %c0_60 = arith.constant 0 : index
    %149 = vector.load %arg9[%c1_59, %c0_60] : memref<2x32xf32, #tpu.memory_space<vmem>>, vector<1x32xf32>
    %150 = vector.broadcast %149 : vector<1x32xf32> to vector<8x32xf32>
    %151 = arith.addf %148, %150 : vector<8x32xf32>
    %152 = arith.addf %137, %151 : vector<8x32xf32>
    %c2_61 = arith.constant 2 : index
    %c0_62 = arith.constant 0 : index
    %153 = vector.load %arg10[%c2_61, %c0_62] : memref<4x32xf32, #tpu.memory_space<vmem>>, vector<1x32xf32>
    %c3_63 = arith.constant 3 : index
    %c0_64 = arith.constant 0 : index
    %154 = vector.load %arg10[%c3_63, %c0_64] : memref<4x32xf32, #tpu.memory_space<vmem>>, vector<1x32xf32>
    %cst_65 = arith.constant dense<0.000000e+00> : vector<8xf32>
    %155 = vector.multi_reduction <add>, %152, %cst_65 [1] : vector<8x32xf32> to vector<8xf32>
    %156 = vector.shape_cast %155 : vector<8xf32> to vector<8x1xf32>
    %cst_66 = arith.constant 3.200000e+01 : f32
    %157 = vector.broadcast %cst_66 : f32 to vector<8x1xf32>
    %158 = arith.divf %156, %157 : vector<8x1xf32>
    %159 = vector.broadcast %158 : vector<8x1xf32> to vector<8x32xf32>
    %160 = arith.subf %152, %159 : vector<8x32xf32>
    %161 = arith.mulf %160, %160 : vector<8x32xf32>
    %cst_67 = arith.constant dense<0.000000e+00> : vector<8xf32>
    %162 = vector.multi_reduction <add>, %161, %cst_67 [1] : vector<8x32xf32> to vector<8xf32>
    %163 = vector.shape_cast %162 : vector<8xf32> to vector<8x1xf32>
    %cst_68 = arith.constant 3.200000e+01 : f32
    %164 = vector.broadcast %cst_68 : f32 to vector<8x1xf32>
    %165 = arith.divf %163, %164 : vector<8x1xf32>
    %cst_69 = arith.constant 9.99999974E-6 : f32
    %166 = vector.broadcast %cst_69 : f32 to vector<8x1xf32>
    %167 = arith.addf %165, %166 : vector<8x1xf32>
    %168 = math.rsqrt %167 : vector<8x1xf32>
    %169 = vector.broadcast %168 : vector<8x1xf32> to vector<8x32xf32>
    %170 = arith.mulf %160, %169 : vector<8x32xf32>
    %171 = vector.broadcast %153 : vector<1x32xf32> to vector<8x32xf32>
    %172 = arith.mulf %170, %171 : vector<8x32xf32>
    %173 = vector.broadcast %154 : vector<1x32xf32> to vector<8x32xf32>
    %174 = arith.addf %172, %173 : vector<8x32xf32>
    %c0_70 = arith.constant 0 : index
    %c0_71 = arith.constant 0 : index
    %c0_72 = arith.constant 0 : index
    %175 = vector.load %arg11[%c0_70, %c0_71, %c0_72] : memref<1x8x32xf32, #tpu.memory_space<vmem>>, vector<1x8x32xf32>
    %176 = vector.shape_cast %175 : vector<1x8x32xf32> to vector<8x32xf32>
    %177 = vector.shape_cast %174 : vector<8x32xf32> to vector<1x8x32xf32>
    tpu.vector_store %arg11[%c0_70, %c0_71, %c0_72], %177 {strides = array<i32>} : memref<1x8x32xf32, #tpu.memory_space<vmem>>, vector<1x8x32xf32>,
    return
  }
  func.func @transform_0(%arg0: i32) -> (i32, i32, i32) {
    %c0_i32 = arith.constant 0 : i32
    %c0_i32_0 = arith.constant 0 : i32
    %c0_i32_1 = arith.constant 0 : i32
    return %arg0, %c0_i32, %c0_i32_0 : i32, i32, i32
  }
  func.func @transform_1(%arg0: i32) -> (i32, i32, i32) {
    %c0_i32 = arith.constant 0 : i32
    %c0_i32_0 = arith.constant 0 : i32
    %c0_i32_1 = arith.constant 0 : i32
    return %arg0, %c0_i32, %c0_i32_0 : i32, i32, i32
  }
  func.func @transform_2(%arg0: i32) -> (i32, i32) {
    %c0_i32 = arith.constant 0 : i32
    %c0_i32_0 = arith.constant 0 : i32
    %c0_i32_1 = arith.constant 0 : i32
    return %c0_i32, %c0_i32_0 : i32, i32
  }
  func.func @transform_3(%arg0: i32) -> (i32, i32, i32) {
    %c0_i32 = arith.constant 0 : i32
    %c0_i32_0 = arith.constant 0 : i32
    %c0_i32_1 = arith.constant 0 : i32
    %c0_i32_2 = arith.constant 0 : i32
    return %c0_i32, %c0_i32_0, %c0_i32_1 : i32, i32, i32
  }
  func.func @transform_4(%arg0: i32) -> (i32, i32) {
    %c0_i32 = arith.constant 0 : i32
    %c0_i32_0 = arith.constant 0 : i32
    %c0_i32_1 = arith.constant 0 : i32
    return %c0_i32, %c0_i32_0 : i32, i32
  }
  func.func @transform_5(%arg0: i32) -> (i32, i32) {
    %c0_i32 = arith.constant 0 : i32
    %c0_i32_0 = arith.constant 0 : i32
    %c0_i32_1 = arith.constant 0 : i32
    return %c0_i32, %c0_i32_0 : i32, i32
  }
  func.func @transform_6(%arg0: i32) -> (i32, i32) {
    %c0_i32 = arith.constant 0 : i32
    %c0_i32_0 = arith.constant 0 : i32
    %c0_i32_1 = arith.constant 0 : i32
    return %c0_i32, %c0_i32_0 : i32, i32
  }
  func.func @transform_7(%arg0: i32) -> (i32, i32) {
    %c0_i32 = arith.constant 0 : i32
    %c0_i32_0 = arith.constant 0 : i32
    %c0_i32_1 = arith.constant 0 : i32
    return %c0_i32, %c0_i32_0 : i32, i32
  }
  func.func @transform_8(%arg0: i32) -> (i32, i32) {
    %c0_i32 = arith.constant 0 : i32
    %c0_i32_0 = arith.constant 0 : i32
    %c0_i32_1 = arith.constant 0 : i32
    return %c0_i32, %c0_i32_0 : i32, i32
  }
  func.func @transform_9(%arg0: i32) -> (i32, i32) {
    %c0_i32 = arith.constant 0 : i32
    %c0_i32_0 = arith.constant 0 : i32
    %c0_i32_1 = arith.constant 0 : i32
    return %c0_i32, %c0_i32_0 : i32, i32
  }
  func.func @transform_10(%arg0: i32) -> (i32, i32, i32) {
    %c0_i32 = arith.constant 0 : i32
    %c0_i32_0 = arith.constant 0 : i32
    %c0_i32_1 = arith.constant 0 : i32
    return %arg0, %c0_i32, %c0_i32_0 : i32, i32, i32
  }
}

</mosaic_0001>

<bundles_post_ra>
// kernel: tpu_custom_call.1
= control target key start
LH: loop header
LB: loop body
LE: loop exit
PB: predicated region body
PF: predicated region fallthrough
CT: control target
= control target key end

     0   :  { %s1830_s0 = inlined_call_operand.vmem [shape: f32[2,8,32], index: 0, kind: input, shape index: {}]   ;;  %s1831_s1 = inlined_call_operand.hbm [shape: bf16[2,8,8], index: 1, kind: input, shape index: {}]   ;;  %s1832_s2 = inlined_call_operand.vmem [shape: bf16[32,96], index: 2, kind: input, shape index: {}]   ;;  %s1833_s3 = inlined_call_operand.vmem [shape: bf16[4,8,32], index: 3, kind: input, shape index: {}]   ;;  %s1834_s4 = inlined_call_operand.hbm [shape: bf16[32,64], index: 4, kind: input, shape index: {}]   ;;  %s1835_s5 = inlined_call_operand.vmem [shape: bf16[64,32], index: 5, kind: input, shape index: {}]   ;;  %s1836_s6 = inlined_call_operand.hbm [shape: f32[1,96], index: 6, kind: input, shape index: {}]   ;;  %s1837_s7 = inlined_call_operand.hbm [shape: f32[1,64], index: 7, kind: input, shape index: {}]   ;;  %s1838_s8 = inlined_call_operand.vmem [shape: f32[2,32], index: 8, kind: input, shape index: {}]   ;;  %s1839_s9 = inlined_call_operand.vmem [shape: f32[4,32], index: 9, kind: input, shape index: {}]   ;;  %s1840_s10 = inlined_call_operand.hbm [shape: f32[2,8,32], index: 10, kind: output, shape index: {}]  }
   0x1   :  { %1841 = sst [smem:[#allocation16_spill]] %s1834_s4 }
   0x2   :  { %1842 = sst [smem:[#allocation17_spill]] %s1836_s6 }
   0x3   :  { %1843 = sst [smem:[#allocation18_spill]] %s1837_s7 }
   0x4   :  { %15 = vsyncpa [#allocation3], 0 }
   0x5   :  { %17 = vsyncpa [#allocation3 + $0x1], 0 }
   0x6   :  { %18 = vsyncpa [#allocation6], 0 }
   0x7   :  { %19 = vsyncpa [#allocation9], 0 }
   0x8   :  { %20 = vsyncpa [#allocation4], 0 }
   0x9   :  { %22 = vsyncpa [#allocation4 + $0x1], 0  ;;  %s1549_s13 = smov 0   ;;  %s1551_s14 = smov 0  }
   0xa   :  { %s1553_s15 = smov 0   ;;  %s1555_s16 = smov 0  }
   0xb LB: > { %s1844_s4 = sld [smem:[#allocation16_spill]]  ;;  %s1573_s20 = sadd.s32 4294967295, %s1475_s16   ;;  %s1475_s16 = sphi %s1555_s16, %s1859_s16   ;;  %s1471_s15 = sphi %s1553_s15, %s1858_s15   ;;  %s1467_s14 = sphi %s1551_s14, %s1857_s14   ;;  %s1463_s13 = sphi %s1549_s13, %s1856_s13  }
   0xc   : > { %p1084_p0 = scmp.ge.s32.totalorder %s1475_s16, 1  ;;  %p75_p1 = scmp.eq.s32.totalorder %s1573_s20, 0 }
   0xd   : > { %p279_p2 = scmp.lt.s32.totalorder %s1475_s16, 3  ;;  %s1477_s22 = smov [#allocation5]  }
   0xe   : > { %s298_s23 = sshll.u32 %s1477_s22, 4  ;;  %s1846_s6 = sld [smem:[#allocation17_spill]]  ;;  %s299_s23 = int_to_ptr.vmem [resolvable:$true] %s298_s23 }
   0xf   : > { %p1578_p3 = pnand %p1084_p0, %p279_p2  ;;  %s1848_s7 = sld [smem:[#allocation18_spill]] }
  0x10   : > { %s1478_s11 = smov [#allocation7]   ;;  %s1479_s17 = smov 64  }
  0x11   : > { %s296_s19 = sshll.u32 %s1844_s4, 4  ;;  %p1176_p4 = pneg %p1578_p3  ;;  %s297_s19 = int_to_ptr.hbm [resolvable:$true] %s296_s19 }
  0x12   : > { %s316_s12 = sshll.u32 %s1478_s11, 4  ;;  %s1480_s18 = smov 4   ;;  %s317_s12 = int_to_ptr.vmem [resolvable:$true] %s316_s12 }
  0x13   : > { %p1590_p6 = pnand %p1176_p4, %p75_p1  ;;  %s1481_s22 = smov [#allocation8]  }
  0x14   : > { %s314_s26 = sshll.u32 %s1846_s6, 4  ;;  %s328_s24 = sshll.u32 %s1481_s22, 4  ;;  %s315_s26 = int_to_ptr.hbm [resolvable:$true] %s314_s26  ;;  %s329_s24 = int_to_ptr.vmem [resolvable:$true] %s328_s24 }
  0x15   : > { %s326_s30 = sshll.u32 %s1848_s7, 4  ;;  %s1083_s25 = sadd.s32 4294967294, %s1475_s16   ;;  %s327_s30 = int_to_ptr.hbm [resolvable:$true] %s326_s30 }
  0x16   : > { %1179 = dma.hbm_to_vmem [thread:$0]  (!%p1590_p6), %s297_s19, 256, %s299_s23, [#allocation6], %s1479_s17, %s1479_s17, %s1480_s18  }
  0x17   : > { %1182 = dma.hbm_to_vmem [thread:$0]  (!%p1590_p6), %s315_s26, 16, %s317_s12, [#allocation6]  }
  0x18   : > { %1185 = dma.hbm_to_vmem [thread:$0]  (!%p1590_p6), %s327_s30, 16, %s329_s24, [#allocation9]  }
  0x19   : > { %s1605_s28 = sadd.s32 1, %s1475_s16   ;;  %s61_s29 = sadd.s32 1, %s1471_s15 }
  0x1a   : > { %s58_s19 = ssub.s32 %s1475_s16, %s1605_s28  ;;  %p68_p7 = scmp.ne.s32.totalorder %s1471_s15, %s1467_s14 }
  0x1b   : > { %p59_p8 = scmp.eq.s32.totalorder %s58_s19, 0  ;;  %p69_p9 = scmp.eq.s32.totalorder %s1475_s16, 0 }
  0x1c   : > { %p74_p10 = scmp.ne.s32.totalorder %s1467_s14, %s1463_s13  ;;  %p266_p11 = scmp.eq.s32.totalorder %s1573_s20, 1 }
  0x1d   : > { %s1617_s23 = scalar_select %p59_p8, %s1471_s15, %s61_s29  }
  0x1e   : > { %p1621_p12 = por %p75_p1, %p74_p10  ;;  %p1625_p13 = por %p266_p11, %p68_p7 }
  0x1f   : > { %1849 = sst [smem:[#allocation15_spill]] %s1617_s23  ;;  %p272_p0 = scmp.eq.s32.totalorder %s1083_s25, 1 }
  0x20   : > { %p70_p2 = por %p69_p9, %p68_p7  ;;  %s352_s30 = sand.u32 1, %s1471_s15  }
  0x21   : > { %p1630_p4 = por %p272_p0, %p74_p10  ;;  %p1197_p6 = scmp.lt.s32.totalorder %s1475_s16, 2 }
  0x22   : > { %s1089_s12 = sshll.u32 %s352_s30, 2  ;;  %s1090_s17 = sshll.u32 %s1475_s16, 2 }
  0x23   : > { %s360_s24 = scalar_lea.hbm %s1831_s1, %s1090_s17  ;;  %s356_s19 = scalar_lea.vmem [#allocation2], %s1089_s12 }
  0x24   : > { %s362_s29 = sshll.u32 %s360_s24, 4  ;;  %s364_s4 = sshll.u32 %s356_s19, 4  ;;  %s363_s29 = int_to_ptr.hbm [resolvable:$true] %s362_s29  ;;  %s365_s4 = int_to_ptr.vmem [resolvable:$true] %s364_s4 }
  0x25   : > { %p1639_p8 = pnand %p1197_p6, %p70_p2  ;;  %s353_s6 = scalar_lea.sflag [#allocation3], %s352_s30 }
  0x26   : > { %s1371_s7 = sshra.s32 %s363_s29, 4  ;;  %s1378_s12 = scalar_lea.hbm %s1831_s1, 8  ;;  %s1372_s7 = int_to_ptr.hbm [resolvable:$true] %s1371_s7 }
  0x27   : > { %s1373_s23 = scalar_lea.hbm %s1372_s7, 4  ;;  %p1375_p9 = pneg %p1639_p8 }
  0x28   : > { %p1374_p7 = scmp.ne.s32.totalorder %s1372_s7, %s1373_s23  ;;  %p1379_p0 = scmp.lt.s32.totalorder %s1372_s7, %s1831_s1 }
  0x29   : > { %p1380_p2 = scmp.lt.s32.totalorder %s1378_s12, %s1373_s23 }
  0x2a   : > { %p1376_p10 = pnand %p1375_p9, %p1374_p7 }
  0x2b   : > { %p1381_p6 = por %p1380_p2, %p1379_p0 }
  0x2c   : > { %p1377_p11 = pneg %p1376_p10 }
  0x2e   : > { %p1382_p5 = pnand %p1381_p6, %p1377_p11 }
  0x30   : > { %1385 = shalt.err (!%p1382_p5)
}
  0x31   : > { %1189 = dma.hbm_to_vmem [thread:$0]  (!%p1639_p8), %s363_s29, 64, %s365_s4, %s353_s6  }
  0x32   : > { %373 = sbr.rel (%p1578_p3) target bundleno = 2332 (0x91c), region = 60  ;;  %s1656_s30 = sand.u32 (!%p1578_p3), 1, %s1467_s14  }
  0x33   : > { %s1092_s19 = sshll.u32 (!%p1578_p3), %s1656_s30, 2  ;;  %s376_s17 = scalar_lea.sflag (!%p1578_p3), [#allocation3], %s1656_s30 }
  0x34   : > { %s1660_s18 = scalar_lea.vmem (!%p1578_p3), [#allocation2], %s1092_s19 }
  0x37   : > { %1446 = dma.done.wait (%p1621_p12), %s376_s17, 64  }
  0x38   : > { %1448 = vsyncadd (%p1621_p12), %s376_s17, 4294967232 }
  0x39   : > { %1450 = dma.done.wait (%p75_p1), [#allocation6], 272  }
  0x3a   : > { %1452 = vsyncadd (%p75_p1), [#allocation6], 4294967024 }
  0x3b   : > { %1454 = dma.done.wait (%p75_p1), [#allocation9], 16  }
  0x3c   : > { %1456 = vsyncadd (%p75_p1), [#allocation9], 4294967280  ;;  %p436_p3 = scmp.lt.s32.totalorder %s1573_s20, 1  ;;  %v1153_v0 = vld [vmem:[%s1832_s2 + $0x8] sm:$0xff]  ;;  %v1152_v1 = vld [vmem:[%s1832_s2] sm:$0xff]  ;;  %vm465_vm0 = vcmask 261120  }
  0x3d   : > { %475 = vmatpush.bf16.msra.mxu0 %v1153_v0  ;;  %v1251_v4 = vld [vmem:[#allocation7] ss:$0 sm:$0xff]  ;;  %s1482_s22 = smov 88   ;;  %s1483_s24 = smov 96   ;;  %vm486_vm1 = vcmask 64512   ;;  %vm523_vm2 = vcmask 1043456  }
  0x3e   : > { %s437_s4 = scalar_select %p436_p3, %s1573_s20, 1  ;;  %v541_v14 = vld [vmem:[%s1833_s3] sm:$0xf]  ;;  %v1111_v60 = vld [vmem:[%s1833_s3 + $0x4] sm:$0xf]  ;;  %vm909_vm7 = vcmask 523264  }
  0x3f   : > { %s1484_s19 = smov 120   ;;  %s1485_s17 = smov 80   ;;  %v624_v17 = vsel %vm523_vm2, %v541_v14, 0  ;;  %v442_v21 = vld [vmem:[%s1660_s18] sm:$0xf]  ;;  %v605_v61 = vsel %vm523_vm2, %v1111_v60, 0 }
  0x40   : > { %s1097_s6 = sshll.u32 %s437_s4, 3  ;;  %s1486_s4 = smov 72   ;;  %v1711_v22 = vunpack.c.l.bf16 %v442_v21 }
  0x41   : > { %s439_s23 = scalar_lea.vmem %s1830_s0, %s1097_s6  ;;  %476 = vmatpush.bf16.msra.mxu0 %v1152_v1  ;;  %s1487_s6 = smov 112  }
  0x42   : > { %v1685_v2 = vld [vmem:[%s439_s23] sm:$0xff]  ;;  %s1488_s18 = smov 56   ;;  %s1489_s23 = smov 40  }
  0x43   : > { %v444_v3 = vpack.c.bf16 %v1685_v2, %v1685_v2  ;;  %s1490_s26 = smov 64   ;;  %s1491_s29 = smov 104  }
  0x44   : > { %s1096_s21 = sshll.u32 %s1656_s30, 3 }
  0x45   : > { %1106 = vmatmul.msk.bf16.vlgmr.msra.gmra.mxu0 %vm465_vm0, %v444_v3 }
  0x46   : > { %614 = vmatpush.bf16.msrb.mxu0 %v605_v61 }
  0xc2   : > { %v478_v5 = vpop.f32.mrf.mxu0 }
  0xc3   : > { %v479_v6 = vadd.f32 %v1251_v4, %v478_v5 }
  0xc5   : > { %v1690_v7 = vpack.c.bf16 %v479_v6, %v479_v6 }
  0xc7   : > { %544 = vrot.lane.b32.xlu2 %v1690_v7, %s1482_s22  ;;  %484 = vrot.lane.b32.xlu0 %v1690_v7, %s1483_s24  ;;  %s1492_s22 = smov 48  }
  0xca   : > { %v480_v8 = vpop.f32.mrf.mxu0 }
  0xcf   : > { %542 = vrot.lane.b32.xlu2 %v1690_v7, %s1484_s19 }
  0xd7   : > { %641 = vrot.lane.b32.xlu2 %v1690_v7, %s1485_s17 }
  0xdf   : > { %720 = vrot.lane.b32.xlu2 %v1690_v7, %s1486_s4  ;;  %s957_s4 = scalar_lea.sflag [#allocation4], %s1656_s30 }
  0xe7   : > { %639 = vrot.lane.b32.xlu2 %v1690_v7, %s1487_s6 }
 0x121   : > { %v545_v9 = vpop.permute.xlu2 %544 }
 0x122   : > { %v550_v10 = vsel %vm486_vm1, %v545_v9, 0 }
 0x123   : > { %559 = vmatpush.bf16.xpose.msra.mxu3 %v550_v10 }
 0x129   : > { %v543_v11 = vpop.permute.xlu2 %542 }
 0x12a   : > { %1109 = vmatmul.msk.bf16.vlgmr.msra.gmra.mxu3 %vm486_vm1, %v543_v11 }
 0x131   : > { %v642_v12 = vpop.permute.xlu2 %641 }
 0x132   : > { %v647_v13 = vsel %vm486_vm1, %v642_v12, 0 }
 0x133   : > { %656 = vmatpush.bf16.xpose.msrb.mxu3 %v647_v13 }
 0x139   : > { %v721_v15 = vpop.permute.xlu2 %720  ;;  %v485_v16 = vpop.permute.xlu0 %484 }
 0x13a   : > { %v491_v18 = vsel %vm486_vm1, %v485_v16, 0  ;;  %v726_v20 = vsel %vm486_vm1, %v721_v15, 0 }
 0x13b   : > { %500 = vmatpush.bf16.xpose.msra.mxu1 %v491_v18 }
 0x141   : > { %v640_v19 = vpop.permute.xlu2 %639 }
 0x142   : > { %1107 = vmatmul.msk.bf16.vlgmr.msra.gmra.mxu1 %vm486_vm1, %v1690_v7  ;;  %1114 = vmatmul.msk.bf16.vlgmr.msrb.gmra.mxu3 %vm486_vm1, %v640_v19 }
 0x143   : > { %633 = vmatpush.bf16.msrb.mxu1 %v624_v17 }
 0x147   : > { %735 = vmatpush.bf16.xpose.msra.mxu1 %v726_v20 }
 0x1ad   : > { %v561_v23 = vpop.f32.mrf.mxu3 }
 0x1ae   : > { %v562_v24 = vadd.f32 %v561_v23, %v1711_v22 }
 0x1b0   : > { %v565_v25 = vsel %vm486_vm1, %v562_v24, -inf }
 0x1b1   : > { %566 = vmax.xlane.f32.xlu2 %v565_v25 }
 0x1b5   : > { %v563_v26 = vpop.f32.mrf.mxu3 }
 0x1bf   : > { %v502_v27 = vpop.f32.mrf.mxu1 }
 0x1c0   : > { %v503_v28 = vadd.f32 %v502_v27, %v1711_v22 }
 0x1c2   : > { %v506_v29 = vsel %vm486_vm1, %v503_v28, -inf }
 0x1c3   : > { %507 = vmax.xlane.f32.xlu0 %v506_v29 }
 0x1c5   : > { %v658_v30 = vpop.f32.mrf.mxu3 }
 0x1c6   : > { %v1718_v31 = vadd.f32 %v658_v30, %v1711_v22 }
 0x1c7   : > { %v504_v32 = vpop.f32.mrf.mxu1 }
 0x1c8   : > { %v662_v33 = vsel %vm486_vm1, %v1718_v31, -inf }
 0x1cb   : > { %663 = vmax.xlane.f32.xlu0 %v662_v33 }
 0x1cd   : > { %v660_v34 = vpop.f32.mrf.mxu3 }
 0x224   : > { %v567_v35 = vpop.xlane.xlu2 %566 }
 0x225   : > { %v568_v36 = vsub.f32 %v562_v24, %v567_v35 }
 0x227   : > { %v569_v37 = vmul.f32 1.442695, %v568_v36  ;;  %v1116_v36 = vld [vmem:[%s1833_s3 + $0x8] sm:$0xf] }
 0x229   : > { %1259 = vpow2.f32 %v569_v37  ;;  %v702_v37 = vsel %vm523_vm2, %v1116_v36, 0 }
 0x22a   : > { %711 = vmatpush.bf16.msra.mxu0 %v702_v37 }
 0x22f   : > { %v1260_v38 = vpop.eup %1259 }
 0x230   : > { %v571_v39 = vsel %vm486_vm1, %v1260_v38, 0.0 }
 0x231   : > { %572 = vadd.xlane.f32.xlu0 %v571_v39 }
 0x236   : > { %v508_v40 = vpop.xlane.xlu0 %507 }
 0x237   : > { %v509_v41 = vsub.f32 %v503_v28, %v508_v40  ;;  %v1120_v28 = vld [vmem:[%s1833_s3 + $0xc] sm:$0xf] }
 0x238   : > { %v781_v33 = vsel %vm523_vm2, %v1120_v28, 0 }
 0x239   : > { %v510_v42 = vmul.f32 1.442695, %v509_v41 }
 0x23b   : > { %1261 = vpow2.f32 %v510_v42 }
 0x23e   : > { %v664_v45 = vpop.xlane.xlu0 %663 }
 0x23f   : > { %v665_v9 = vsub.f32 %v1718_v31, %v664_v45 }
 0x241   : > { %v1262_v43 = vpop.eup %1261  ;;  %v666_v10 = vmul.f32 1.442695, %v665_v9 }
 0x242   : > { %v512_v44 = vsel %vm486_vm1, %v1262_v43, 0.0 }
 0x243   : > { %513 = vadd.xlane.f32.xlu1 %v512_v44 }
 0x245   : > { %577 = vrot.lane.b32.xlu0 %v1690_v7, %s1488_s18  ;;  %s1149_s18 = sshll.u32 %s1573_s20, 3  ;;  %s435_s20 = scalar_lea.vmem [#allocation10], %s1096_s21 }
 0x246   : > { %s967_s12 = scalar_lea.hbm %s1840_s10, %s1149_s18  ;;  %s969_s19 = sshll.u32 %s435_s20, 4  ;;  %s970_s19 = int_to_ptr.vmem [resolvable:$true] %s969_s19 }
 0x247   : > { %s971_s17 = sshll.u32 %s967_s12, 4  ;;  %s1421_s21 = scalar_lea.hbm %s1840_s10, 16  ;;  %s972_s17 = int_to_ptr.hbm [resolvable:$true] %s971_s17 }
 0x248   : > { %s1415_s6 = sshra.s32 %s972_s17, 4  ;;  %s1416_s6 = int_to_ptr.hbm [resolvable:$true] %s1415_s6 }
 0x249   : > { %s1417_s7 = scalar_lea.hbm %s1416_s6, 8  ;;  %p1422_p8 = scmp.lt.s32.totalorder %s1416_s6, %s1840_s10 }
 0x24a   : > { %p1418_p1 = scmp.ne.s32.totalorder %s1416_s6, %s1417_s7  ;;  %p1423_p7 = scmp.lt.s32.totalorder %s1421_s21, %s1417_s7 }
 0x24c   : > { %p1419_p5 = pnand %p1418_p1, %p1625_p13  ;;  %p1424_p9 = por %p1423_p7, %p1422_p8 }
 0x24d   : > { %753 = vrot.lane.b32.xlu0 %v1690_v7, %s1489_s23 }
 0x24e   : > { %p1420_p12 = pneg %p1419_p5 }
 0x250   : > { %p1425_p10 = pnand %p1424_p9, %p1420_p12 }
 0x25c   : > { %518 = vrot.lane.b32.xlu1 %v1690_v7, %s1490_s26 }
 0x264   : > { %718 = vrot.lane.b32.xlu1 %v1690_v7, %s1491_s29 }
 0x2a4   : > { %v573_v46 = vpop.xlane.xlu0 %572 }
 0x2b6   : > { %v514_v50 = vpop.xlane.xlu1 %513 }
 0x2b7   : > { %v578_v47 = vpop.permute.xlu0 %577  ;;  %1263 = vrcp.f32 %v514_v50 }
 0x2b8   : > { %v583_v55 = vsel %vm523_vm2, %v578_v47, 0  ;;  %1265 = vrcp.f32 %v573_v46  ;;  %v1252_v46 = vld [vmem:[%s1838_s8] ss:$0 sm:$0xff] }
 0x2b9   : > { %1267 = vpow2.f32 %v666_v10 }
 0x2bd   : > { %v1264_v51 = vpop.eup %1263 }
 0x2be   : > { %v516_v52 = vmul.f32 %v1264_v51, %v1262_v43  ;;  %v1266_v57 = vpop.eup %1265 }
 0x2bf   : > { %v754_v48 = vpop.permute.xlu0 %753  ;;  %v575_v58 = vmul.f32 %v1266_v57, %v1260_v38  ;;  %v1268_v16 = vpop.eup %1267 }
 0x2c0   : > { %v759_v49 = vsel %vm523_vm2, %v754_v48, 0  ;;  %v517_v56 = vpack.c.bf16 %v516_v52, %v516_v52  ;;  %v668_v19 = vsel %vm486_vm1, %v1268_v16, 0.0 }
 0x2c1   : > { %768 = vmatpush.bf16.msra.mxu3 %v759_v49  ;;  %v576_v59 = vpack.c.bf16 %v575_v58, %v575_v58 }
 0x2ce   : > { %v519_v53 = vpop.permute.xlu1 %518 }
 0x2cf   : > { %v525_v54 = vsel %vm523_vm2, %v519_v53, 0 }
 0x2d0   : > { %534 = vmatpush.bf16.msra.mxu2 %v525_v54  ;;  %v1493_v54 = vmov 32.0  }
 0x2d3   : > { %1108 = vmatmul.msk.bf16.vlgmr.msra.gmra.mxu2 %vm486_vm1, %v517_v56 }
 0x2d4   : > { %592 = vmatpush.bf16.msrb.mxu2 %v583_v55 }
 0x2d6   : > { %v719_v4 = vpop.permute.xlu1 %718 }
 0x2e3   : > { %1110 = vmatmul.msk.bf16.vlgmr.msrb.gmra.mxu2 %vm486_vm1, %v576_v59 }
 0x356   : > { %v536_v62 = vpop.f32.mrf.mxu2 }
 0x357   : > { %v540_v63 = vpack.c.bf16 %v536_v62, %v536_v62 }
 0x359   : > { %1113 = vmatmul.msk.bf16.vlgmr.msrb.gmra.mxu1 %vm486_vm1, %v540_v63 }
 0x35e   : > { %v538_v0 = vpop.f32.mrf.mxu2 }
 0x366   : > { %v594_v1 = vpop.f32.mrf.mxu2 }
 0x367   : > { %v598_v3 = vpack.c.bf16 %v594_v1, %v594_v1 }
 0x369   : > { %1112 = vmatmul.msk.bf16.vlgmr.msrb.gmra.mxu0 %vm486_vm1, %v598_v3  ;;  %1118 = vmatmul.msk.bf16.vlgmr.msra.gmra.mxu1 %vm486_vm1, %v719_v4  ;;  %v1154_v3 = vld [vmem:[#allocation5] sm:$0xff]  ;;  %v1159_v4 = vld [vmem:[%s1835_s5 + $0x18] sm:$0xff] }
 0x36a   : > { %917 = vmatpush.bf16.msrb.mxu1 %v1159_v4 }
 0x36e   : > { %v596_v5 = vpop.f32.mrf.mxu2 }
 0x3d6   : > { %v635_v6 = vpop.f32.mrf.mxu1 }
 0x3de   : > { %v637_v8 = vpop.f32.mrf.mxu1 }
 0x3df   : > { %v1158_v8 = vld [vmem:[%s1835_s5 + $0x10] sm:$0xff] }
 0x3e0   : > { %918 = vmatpush.bf16.msrb.mxu1 %v1158_v8 }
 0x3e6   : > { %v616_v11 = vpop.f32.mrf.mxu0  ;;  %v737_v12 = vpop.f32.mrf.mxu1 }
 0x3e7   : > { %v636_v13 = vadd.f32 %v635_v6, %v616_v11  ;;  %v738_v14 = vadd.f32 %v737_v12, %v1711_v22 }
 0x3e9   : > { %v741_v15 = vsel %vm486_vm1, %v738_v14, -inf }
 0x3ea   : > { %742 = vmax.xlane.f32.xlu1 %v741_v15 }
 0x3ee   : > { %v618_v17 = vpop.f32.mrf.mxu0  ;;  %v739_v18 = vpop.f32.mrf.mxu1 }
 0x3ef   : > { %v1254_v18 = vld [vmem:[%s1839_s9 + $0x1] ss:$0 sm:$0xff] }
 0x3f2   : > { %669 = vadd.xlane.f32.xlu1 %v668_v19 }
 0x45d   : > { %v743_v20 = vpop.xlane.xlu1 %742 }
 0x45e   : > { %v744_v21 = vsub.f32 %v738_v14, %v743_v20 }
 0x460   : > { %v745_v23 = vmul.f32 1.442695, %v744_v21 }
 0x462   : > { %1269 = vpow2.f32 %v745_v23 }
 0x465   : > { %v670_v22 = vpop.xlane.xlu1 %669 }
 0x466   : > { %1271 = vrcp.f32 %v670_v22  ;;  %v1255_v22 = vld [vmem:[#allocation8] ss:$0 sm:$0xff] }
 0x468   : > { %v1270_v24 = vpop.eup %1269 }
 0x469   : > { %v747_v25 = vsel %vm486_vm1, %v1270_v24, 0.0 }
 0x46a   : > { %748 = vadd.xlane.f32.xlu2 %v747_v25  ;;  %v1156_v25 = vld [vmem:[%s1835_s5] sm:$0xff] }
 0x46c   : > { %v1272_v27 = vpop.eup %1271 }
 0x46d   : > { %v672_v30 = vmul.f32 %v1272_v27, %v1268_v16  ;;  %v1253_v16 = vld [vmem:[%s1839_s9] ss:$0 sm:$0xff] }
 0x482   : > { %674 = vrot.lane.b32.xlu2 %v1690_v7, %s1492_s22  ;;  %v673_v7 = vpack.c.bf16 %v672_v30, %v672_v30 }
 0x4dd   : > { %v749_v26 = vpop.xlane.xlu2 %748 }
 0x4de   : > { %1273 = vrcp.f32 %v749_v26 }
 0x4df   : > { %1275 = vrcp.f32 %v1493_v54 }
 0x4e4   : > { %v1274_v29 = vpop.eup %1273 }
 0x4e5   : > { %v751_v31 = vmul.f32 %v1274_v29, %v1270_v24  ;;  %v675_v32 = vpop.permute.xlu2 %674  ;;  %v1276_v55 = vpop.eup %1275  ;;  %v1157_v24 = vld [vmem:[%s1835_s5 + $0x8] sm:$0xff] }
 0x4e6   : > { %v680_v34 = vsel %vm523_vm2, %v675_v32, 0  ;;  %v807_v56 = vmul.f32 32.0, %v1276_v55  ;;  %vm811_vm3 = vweird.f32 %v1276_v55  ;;  %919 = vmatpush.bf16.msrb.mxu1 %v1157_v24 }
 0x4e7   : > { %v752_v35 = vpack.c.bf16 %v751_v31, %v751_v31  ;;  %689 = vmatpush.bf16.msra.mxu2 %v680_v34  ;;  %v1256_v31 = vld [vmem:[%s1838_s8 + $0x1] ss:$0 sm:$0xff] }
 0x4e8   : > { %v808_v57 = vsub.f32 1.0, %v807_v56 }
 0x4e9   : > { %1119 = vmatmul.msk.bf16.vlgmr.msra.gmra.mxu3 %vm486_vm1, %v752_v35 }
 0x4ea   : > { %1115 = vmatmul.msk.bf16.vlgmr.msra.gmra.mxu2 %vm486_vm1, %v673_v7  ;;  %v809_v58 = vmul.f32 %v1276_v55, %v808_v57  ;;  %920 = vmatpush.bf16.msrb.mxu1 %v1156_v25 }
 0x4eb   : > { %790 = vmatpush.bf16.msrb.mxu2 %v781_v33 }
 0x4ec   : > { %v810_v59 = vadd.f32 %v1276_v55, %v809_v58 }
 0x4ee   : > { %v812_v60 = vsel %vm811_vm3, %v1276_v55, %v810_v59 }
 0x56c   : > { %v770_v38 = vpop.f32.mrf.mxu3 }
 0x56d   : > { %v774_v39 = vpack.c.bf16 %v770_v38, %v770_v38  ;;  %v691_v40 = vpop.f32.mrf.mxu2 }
 0x56e   : > { %v695_v41 = vpack.c.bf16 %v691_v40, %v691_v40 }
 0x56f   : > { %1121 = vmatmul.msk.bf16.vlgmr.msrb.gmra.mxu2 %vm486_vm1, %v774_v39 }
 0x570   : > { %1117 = vmatmul.msk.bf16.vlgmr.msra.gmra.mxu0 %vm486_vm1, %v695_v41 }
 0x574   : > { %v772_v42 = vpop.f32.mrf.mxu3 }
 0x575   : > { %v693_v43 = vpop.f32.mrf.mxu2 }
 0x5ed   : > { %v713_v44 = vpop.f32.mrf.mxu0 }
 0x5ee   : > { %v717_v45 = vadd.f32 %v713_v44, %v636_v13 }
 0x5f2   : > { %v792_v47 = vpop.f32.mrf.mxu2 }
 0x5f3   : > { %v796_v48 = vadd.f32 %v792_v47, %v717_v45 }
 0x5f5   : > { %v799_v49 = vadd.f32 %v1252_v46, %v796_v48  ;;  %v715_v50 = vpop.f32.mrf.mxu0 }
 0x5f6   : > { %v1257_v50 = vld [vmem:[%s1839_s9 + $0x2] ss:$0 sm:$0xff] }
 0x5f7   : > { %v800_v51 = vadd.f32 %v799_v49, %v1685_v2  ;;  %v1155_v2 = vld [vmem:[#allocation5 + $0x8] sm:$0xff] }
 0x5f8   : > { %866 = vmatpush.bf16.msrb.mxu0 %v1155_v2 }
 0x5f9   : > { %v803_v52 = vsel %vm465_vm0, %v800_v51, 0.0 }
 0x5fa   : > { %804 = vadd.xlane.f32.xlu1 %v803_v52  ;;  %v794_v53 = vpop.f32.mrf.mxu2 }
 0x5fb   : > { %v1258_v53 = vld [vmem:[%s1839_s9 + $0x3] ss:$0 sm:$0xff] }
 0x5fc   : > { %867 = vmatpush.bf16.msrb.mxu0 %v1154_v3 }
 0x66d   : > { %v805_v61 = vpop.xlane.xlu1 %804 }
 0x66e   : > { %v813_v62 = vmul.f32 %v812_v60, %v805_v61 }
 0x670   : > { %v814_v63 = vsub.f32 %v800_v51, %v813_v62 }
 0x672   : > { %v815_v0 = vmul.f32 %v814_v63, %v814_v63 }
 0x674   : > { %v816_v1 = vsel %vm465_vm0, %v815_v0, 0.0 }
 0x675   : > { %817 = vadd.xlane.f32.xlu0 %v816_v1 }
 0x6e8   : > { %v818_v5 = vpop.xlane.xlu0 %817 }
 0x6e9   : > { %v819_v6 = vmul.f32 %v818_v5, %v812_v60 }
 0x6eb   : > { %v820_v9 = vadd.f32 1e-05, %v819_v6 }
 0x6ed   : > { %1277 = vrsqrt.f32 %v820_v9  ;;  %vm827_vm5 = vweird.f32 %v820_v9 }
 0x6f3   : > { %v1278_v10 = vpop.eup %1277 }
 0x6f4   : > { %v822_v11 = vmul.f32 %v1278_v10, %v820_v9  ;;  %vm828_vm4 = vweird.f32 %v1278_v10 }
 0x6f5   : > { %vm829_vm6 = vmor %vm827_vm5, %vm828_vm4 }
 0x6f6   : > { %v823_v12 = vmul.f32 %v1278_v10, %v822_v11 }
 0x6f8   : > { %v824_v13 = vmul.f32 0.5, %v823_v12 }
 0x6fa   : > { %v825_v14 = vsub.f32 1.5, %v824_v13 }
 0x6fc   : > { %v826_v15 = vmul.f32 %v1278_v10, %v825_v14 }
 0x6fe   : > { %v830_v17 = vsel %vm829_vm6, %v1278_v10, %v826_v15 }
 0x6ff   : > { %v831_v19 = vmul.f32 %v830_v17, %v814_v63 }
 0x701   : > { %v833_v20 = vmul.f32 %v1253_v16, %v831_v19 }
 0x703   : > { %v835_v21 = vadd.f32 %v1254_v18, %v833_v20 }
 0x705   : > { %v836_v23 = vpack.c.bf16 %v835_v21, %v835_v21 }
 0x707   : > { %1130 = vmatmul.msk.bf16.vlgmr.msrb.gmra.mxu0 %vm465_vm0, %v836_v23 }
 0x784   : > { %v869_v26 = vpop.f32.mrf.mxu0 }
 0x785   : > { %v870_v27 = vadd.f32 %v1255_v22, %v869_v26 }
 0x787   : > { %v873_v28 = vmax.f32 %v870_v27, 0.0 }
 0x789   : > { %v874_v29 = vpack.c.bf16 %v873_v28, %v873_v28 }
 0x78b   : > { %1147 = vmatmul.msk.bf16.vlgmr.msrb.gmra.mxu1 %vm909_vm7, %v874_v29 }
 0x78c   : > { %v871_v30 = vpop.f32.mrf.mxu0 }
 0x808   : > { %v922_v32 = vpop.f32.mrf.mxu1 }
 0x809   : > { %v923_v33 = vadd.f32 %v1256_v31, %v922_v32 }
 0x80b   : > { %v926_v34 = vadd.f32 %v923_v33, %v835_v21 }
 0x80d   : > { %v929_v35 = vsel %vm465_vm0, %v926_v34, 0.0 }
 0x80e   : > { %930 = vadd.xlane.f32.xlu1 %v929_v35 }
 0x810   : > { %v924_v7 = vpop.f32.mrf.mxu1 }
 0x881   : > { %v931_v36 = vpop.xlane.xlu1 %930 }
 0x882   : > { %v932_v37 = vmul.f32 %v931_v36, %v812_v60 }
 0x884   : > { %v933_v38 = vsub.f32 %v926_v34, %v932_v37 }
 0x886   : > { %v934_v39 = vmul.f32 %v933_v38, %v933_v38 }
 0x888   : > { %v935_v40 = vsel %vm465_vm0, %v934_v39, 0.0 }
 0x889   : > { %936 = vadd.xlane.f32.xlu1 %v935_v40 }
 0x8fc   : > { %v937_v41 = vpop.xlane.xlu1 %936 }
 0x8fd   : > { %v938_v42 = vmul.f32 %v937_v41, %v812_v60 }
 0x8ff   : > { %v939_v43 = vadd.f32 1e-05, %v938_v42 }
 0x901   : > { %1279 = vrsqrt.f32 %v939_v43  ;;  %vm946_vm9 = vweird.f32 %v939_v43 }
 0x907   : > { %v1280_v44 = vpop.eup %1279 }
 0x908   : > { %v941_v45 = vmul.f32 %v1280_v44, %v939_v43  ;;  %vm947_vm8 = vweird.f32 %v1280_v44 }
 0x909   : > { %vm948_vm10 = vmor %vm946_vm9, %vm947_vm8 }
 0x90a   : > { %v942_v46 = vmul.f32 %v1280_v44, %v941_v45 }
 0x90c   : > { %v943_v47 = vmul.f32 0.5, %v942_v46 }
 0x90e   : > { %v944_v48 = vsub.f32 1.5, %v943_v47 }
 0x910   : > { %v945_v49 = vmul.f32 %v1280_v44, %v944_v48 }
 0x912   : > { %v949_v51 = vsel %vm948_vm10, %v1280_v44, %v945_v49 }
 0x913   : > { %v950_v52 = vmul.f32 %v949_v51, %v933_v38 }
 0x915   : > { %v952_v54 = vmul.f32 %v1257_v50, %v950_v52 }
 0x917   : > { %v954_v55 = vadd.f32 %v1258_v53, %v952_v54 }
 0x919   : > { %955 = vst.msk [vmem:[%s435_s20] sm:$0xff] %vm465_vm0, %v954_v55 }
 0x91a   : > { %1428 = shalt.err (!%p1425_p10)
}
 0x91b   : > { %1174 = dma.vmem_to_hbm [thread:$0]  (%p1625_p13), %s970_s19, 128, %s972_s17, %s957_s4  }
 0x91c PF: > { %s983_s30 = sand.u32 1, %s1463_s13   ;;  %p1854_p11 = scmp.ge.s32.totalorder %s1475_s16, 2 }
 0x91d   : > { %s984_s25 = scalar_lea.sflag [#allocation4], %s983_s30 }
 0x91e   : > { %p1191_p0 = pnand %p1854_p11, %p1630_p4 }
 0x920   : > { %p1192_p2 = pneg %p1191_p0 }
 0x922   : > { %1458 = dma.done.wait (%p1192_p2), %s984_s25, 128  }
 0x923   : > { %1460 = vsyncadd (%p1192_p2), %s984_s25, 4294967168  ;;  %s1855_s12 = sld [smem:[#allocation15_spill]]  ;;  %p25_p6 = scmp.ge.s32.totalorder %s1605_s28, 4  }
 0x924   : > { %s1856_s13 = smov %s1467_s14  ;;  %s1857_s14 = smov %s1471_s15 }
 0x925   : > { %s1859_s16 = smov %s1605_s28  ;;  %27 = sbr.rel (!%p25_p6) target bundleno = 11 (0xb), region = 123 }
 0x929   : > { %s1858_s15 = smov %s1855_s12 }
 0x92a   :  { %990 = vsyncpa [#allocation3], 1 }
 0x92b   :  { %992 = vsyncpa [#allocation3 + $0x1], 1 }
 0x92c   :  { %993 = vsyncpa [#allocation6], 1 }
 0x92d   :  { %994 = vsyncpa [#allocation9], 1 }
 0x92e   :  { %995 = vsyncpa [#allocation4], 1 }
 0x92f   :  { %997 = vsyncpa [#allocation4 + $0x1], 1 }

</bundles_post_ra>
